<compile_context>
chip_gen: v7x
topology: tpu7x:2x2x1
jax: 0.10.0
libtpu: 0.0.40
codegen_flags: <defaults>
</compile_context>

<pallas_src>
import functools

import jax
import jax.numpy as jnp
from jax.experimental import pallas as pl
from jax.experimental.pallas import tpu as pltpu


def _round_up(x, m):
    return ((x + m - 1) // m) * m


def _bottleneck_kernel(*refs, L, has_downsample):
    # refs: x (1,Cin,L), w1 (P,Cin), b1 (P,1), w2 (3,P,P), b2 (P,1),
    #       w3 (Cout,P), b3 (Cout,1), [wd (Cout,Cin), bd (Cout,1)],
    #       out (1,Cout,L), scratch h1_pad (P, Lp)
    if has_downsample:
        (x_ref, w1_ref, b1_ref, w2_ref, b2_ref, w3_ref, b3_ref,
         wd_ref, bd_ref, o_ref, h1_ref) = refs
    else:
        (x_ref, w1_ref, b1_ref, w2_ref, b2_ref, w3_ref, b3_ref,
         o_ref, h1_ref) = refs
        wd_ref = bd_ref = None

    f32 = jnp.float32
    x = x_ref[0]                                    # (Cin, L), compute dtype

    # ---- conv1: 1x1 conv + BN + ReLU (BN scale folded into w1) -----------
    h1 = jnp.dot(w1_ref[...], x, preferred_element_type=f32)
    h1 = jnp.maximum(h1 + b1_ref[...], 0.0)

    # ---- stage h1 into a VMEM scratch with a zero halo (conv2 pad=1) -----
    # scratch layout: col 0 = left zero pad, cols [1, L] = h1, cols >= L+1 =
    # right zero pad + lane-padding tail (re-zeroed every step so tap
    # overreads always see zeros).
    planes, Lp = h1_ref.shape
    h1_ref[:, 0:1] = jnp.zeros((planes, 1), h1_ref.dtype)
    h1_ref[:, L + 1:Lp] = jnp.zeros((planes, Lp - L - 1), h1_ref.dtype)
    h1_ref[:, 1:L + 1] = h1.astype(h1_ref.dtype)
    h1p = h1_ref[...]                               # (planes, Lp)

    # ---- conv2: K=3, pad=1, stride=1 + BN + ReLU (3 shifted MXU taps) ----
    acc = jnp.dot(w2_ref[0], h1p[:, 0:L], preferred_element_type=f32)
    acc += jnp.dot(w2_ref[1], h1p[:, 1:L + 1], preferred_element_type=f32)
    acc += jnp.dot(w2_ref[2], h1p[:, 2:L + 2], preferred_element_type=f32)
    h2 = jnp.maximum(acc + b2_ref[...], 0.0)

    # ---- conv3: 1x1 conv + BN (no ReLU before the residual add) ----------
    out = jnp.dot(w3_ref[...], h2.astype(w3_ref.dtype),
                  preferred_element_type=f32)
    out = out + b3_ref[...]

    # ---- residual + final ReLU (fused) ------------------------------------
    if has_downsample:
        idn = jnp.dot(wd_ref[...], x, preferred_element_type=f32)
        idn = idn + bd_ref[...]
    else:
        idn = x.astype(f32)
    o_ref[0] = jnp.maximum(out + idn, 0.0).astype(o_ref.dtype)


def _fold_bn(weight, gamma, beta, mean, var, eps):
    """Fold eval-mode BatchNorm into the conv weight + a per-channel shift."""
    scale = gamma / jnp.sqrt(var + eps)
    w = weight * scale[:, None, None]
    shift = (beta - mean * scale).reshape(-1, 1).astype(jnp.float32)
    return w, shift


def bottleneck(x, params, *, downsample=None, stride=1, eps=1e-5,
               compute_dtype=jnp.float32):
    """Fused Bottleneck forward (eval-mode BN), one pallas_call.

    x:          (N, C_in, L) float32, NCL layout.
    params:     dict with 'conv1'/'conv2'/'conv3', each a tuple
                (weight, gamma, beta, running_mean, running_var); conv weights
                use PyTorch layout (C_out, C_in, K).
    downsample: optional same-form tuple for a 1x1 BasicConv on the identity.
    """
    if stride != 1:
        raise NotImplementedError(
            "fused Bottleneck kernel supports stride=1 "
            "# TODO(synk): stride > 1 variant")

    N, Cin, L = x.shape
    w1, s1 = _fold_bn(*params["conv1"], eps)
    w2, s2 = _fold_bn(*params["conv2"], eps)
    w3, s3 = _fold_bn(*params["conv3"], eps)
    planes = w1.shape[0]
    Cout = w3.shape[0]
    assert w1.shape == (planes, Cin, 1)
    assert w2.shape == (planes, planes, 3)
    assert w3.shape == (Cout, planes, 1)

    w1_k = w1[:, :, 0].astype(compute_dtype)                    # (P, Cin)
    w2_k = jnp.transpose(w2, (2, 0, 1)).astype(compute_dtype)   # (3, P, P)
    w3_k = w3[:, :, 0].astype(compute_dtype)                    # (Cout, P)
    x_c = x.astype(compute_dtype)

    inputs = [x_c, w1_k, s1, w2_k, s2, w3_k, s3]
    in_specs = [
        pl.BlockSpec((1, Cin, L), lambda n: (n, 0, 0)),
        pl.BlockSpec((planes, Cin), lambda n: (0, 0)),
        pl.BlockSpec((planes, 1), lambda n: (0, 0)),
        pl.BlockSpec((3, planes, planes), lambda n: (0, 0, 0)),
        pl.BlockSpec((planes, 1), lambda n: (0, 0)),
        pl.BlockSpec((Cout, planes), lambda n: (0, 0)),
        pl.BlockSpec((Cout, 1), lambda n: (0, 0)),
    ]

    has_downsample = downsample is not None
    ds_flops = 0
    if has_downsample:
        wd, sd = _fold_bn(*downsample, eps)
        assert wd.shape == (Cout, Cin, 1), "downsample must be a 1x1 conv"
        inputs += [wd[:, :, 0].astype(compute_dtype), sd]
        in_specs += [pl.BlockSpec((Cout, Cin), lambda n: (0, 0)),
                     pl.BlockSpec((Cout, 1), lambda n: (0, 0))]
        ds_flops = 2 * Cout * Cin * L
    else:
        assert Cin == Cout, "identity path requires C_in == planes * expansion"

    # Lane-padded scratch for h1: col 0 / col L+1.. are the conv2 zero halo.
    Lp = _round_up(L + 2, 128)

    flops = N * (2 * L * (planes * Cin + 3 * planes * planes + Cout * planes)
                 + ds_flops)
    bytes_accessed = int(4 * (x.size + N * Cout * L)
                         + sum(4 * a.size for a in inputs[1:]))

    return pl.pallas_call(
        functools.partial(_bottleneck_kernel, L=L,
                          has_downsample=has_downsample),
        out_shape=jax.ShapeDtypeStruct((N, Cout, L), x.dtype),
        grid_spec=pltpu.PrefetchScalarGridSpec(
            num_scalar_prefetch=0,
            grid=(N,),
            in_specs=in_specs,
            out_specs=pl.BlockSpec((1, Cout, L), lambda n: (n, 0, 0)),
            scratch_shapes=[pltpu.VMEM((planes, Lp), compute_dtype)],
        ),
        compiler_params=pltpu.CompilerParams(
            dimension_semantics=("parallel",),
            vmem_limit_bytes=32 * 1024 * 1024),
        cost_estimate=pl.CostEstimate(flops=int(flops), transcendentals=0,
                                      bytes_accessed=bytes_accessed),
    )(*inputs)


# ----------------------------- reference (plain JAX) ------------------------
def _ref_basic_conv(x, w, g, b, m, v, stride, padding, activation, eps=1e-5):
    y = jax.lax.conv_general_dilated(
        x, w, window_strides=(stride,), padding=[(padding, padding)],
        dimension_numbers=("NCH", "OIH", "NCH"))
    scale = g / jnp.sqrt(v + eps)
    y = y * scale[None, :, None] + (b - m * scale)[None, :, None]
    if activation:
        y = jnp.maximum(y, 0.0)
    return y


def _ref_bottleneck(x, params, downsample=None, stride=1):
    h = _ref_basic_conv(x, *params["conv1"], 1, 0, True)
    h = _ref_basic_conv(h, *params["conv2"], stride, 1, True)
    h = _ref_basic_conv(h, *params["conv3"], 1, 0, False)
    idn = x if downsample is None else _ref_basic_conv(
        x, *downsample, stride, 0, False)
    return jnp.maximum(h + idn, 0.0)


def _make_conv_bn_params(key, cin, cout, k):
    kw, kg, kb, km, kv = jax.random.split(key, 5)
    w = jax.random.normal(kw, (cout, cin, k), dtype=jnp.float32) * 0.1
    g = jax.random.normal(kg, (cout,), dtype=jnp.float32) * 0.1 + 1.0
    b = jax.random.normal(kb, (cout,), dtype=jnp.float32) * 0.1
    m = jax.random.normal(km, (cout,), dtype=jnp.float32) * 0.1
    v = jax.random.uniform(kv, (cout,), dtype=jnp.float32,
                           minval=0.5, maxval=1.5)
    return (w, g, b, m, v)


if __name__ == "__main__":
    key = jax.random.PRNGKey(0)
    N, L, planes, expansion = 2, 16, 4, 4

    # --- case 1: Bottleneck(inplanes=16, planes=4), stride=1, no downsample --
    inplanes = planes * expansion
    kx, k1, k2, k3, k4, k5 = jax.random.split(key, 6)
    x = jax.random.normal(kx, (N, inplanes, L), dtype=jnp.float32)
    params = {
        "conv1": _make_conv_bn_params(k1, inplanes, planes, 1),
        "conv2": _make_conv_bn_params(k2, planes, planes, 3),
        "conv3": _make_conv_bn_params(k3, planes, planes * expansion, 1),
    }
    fwd = jax.jit(lambda xx, pp: bottleneck(xx, pp))
    y = jax.block_until_ready(fwd(x, params))
    ref = _ref_bottleneck(x, params)
    assert y.shape == (N, inplanes, L), y.shape
    assert jnp.allclose(y, ref, atol=1e-4, rtol=1e-4), float(
        jnp.max(jnp.abs(y - ref)))

    # --- case 2: channel-changing block with a 1x1 downsample on the identity
    inplanes2 = 8
    x2 = jax.random.normal(k4, (N, inplanes2, L), dtype=jnp.float32)
    params2 = {
        "conv1": _make_conv_bn_params(k1, inplanes2, planes, 1),
        "conv2": _make_conv_bn_params(k2, planes, planes, 3),
        "conv3": _make_conv_bn_params(k3, planes, planes * expansion, 1),
    }
    ds = _make_conv_bn_params(k5, inplanes2, planes * expansion, 1)
    fwd2 = jax.jit(lambda xx, pp, dd: bottleneck(xx, pp, downsample=dd))
    y2 = jax.block_until_ready(fwd2(x2, params2, ds))
    ref2 = _ref_bottleneck(x2, params2, downsample=ds)
    assert y2.shape == (N, planes * expansion, L), y2.shape
    assert jnp.allclose(y2, ref2, atol=1e-4, rtol=1e-4), float(
        jnp.max(jnp.abs(y2 - ref2)))

    print("KERNEL_OK")
</pallas_src>

<mosaic_0001>
module attributes {stable_mosaic.version = 11 : i64} {
  func.func @_bottleneck_kernel(%arg0: i32, %arg1: memref<1x16x16xf32, #tpu.memory_space<vmem>>, %arg2: memref<4x16xf32, #tpu.memory_space<vmem>>, %arg3: memref<4x1xf32, #tpu.memory_space<vmem>>, %arg4: memref<3x4x4xf32, #tpu.memory_space<vmem>>, %arg5: memref<4x1xf32, #tpu.memory_space<vmem>>, %arg6: memref<16x4xf32, #tpu.memory_space<vmem>>, %arg7: memref<16x1xf32, #tpu.memory_space<vmem>>, %arg8: memref<1x16x16xf32, #tpu.memory_space<vmem>>, %arg9: memref<4x128xf32, #tpu.memory_space<vmem>>) attributes {dimension_semantics = [#tpu.dimension_semantics<parallel>], iteration_bounds = array<i64: 2>, scalar_prefetch = 0 : i64, scratch_operands = 1 : i64, tpu.core_type = #tpu.core_type<tc>, window_params = [{transform_indices = @transform_0, window_bounds = array<i64: 1, 16, 16>}, {pipeline_mode = #tpu.pipeline_mode<synchronous>, transform_indices = @transform_1, window_bounds = array<i64: 4, 16>}, {pipeline_mode = #tpu.pipeline_mode<synchronous>, transform_indices = @transform_2, window_bounds = array<i64: 4, 1>}, {pipeline_mode = #tpu.pipeline_mode<synchronous>, transform_indices = @transform_3, window_bounds = array<i64: 3, 4, 4>}, {pipeline_mode = #tpu.pipeline_mode<synchronous>, transform_indices = @transform_4, window_bounds = array<i64: 4, 1>}, {pipeline_mode = #tpu.pipeline_mode<synchronous>, transform_indices = @transform_5, window_bounds = array<i64: 16, 4>}, {pipeline_mode = #tpu.pipeline_mode<synchronous>, transform_indices = @transform_6, window_bounds = array<i64: 16, 1>}, {transform_indices = @transform_7, window_bounds = array<i64: 1, 16, 16>}]} {
    %c0 = arith.constant 0 : index
    %c0_0 = arith.constant 0 : index
    %c0_1 = arith.constant 0 : index
    %0 = vector.load %arg1[%c0, %c0_0, %c0_1] : memref<1x16x16xf32, #tpu.memory_space<vmem>>, vector<1x16x16xf32>
    %1 = vector.shape_cast %0 : vector<1x16x16xf32> to vector<16x16xf32>
    %c0_2 = arith.constant 0 : index
    %c0_3 = arith.constant 0 : index
    %2 = vector.load %arg2[%c0_2, %c0_3] : memref<4x16xf32, #tpu.memory_space<vmem>>, vector<4x16xf32>
    %cst = arith.constant dense<0.000000e+00> : vector<4x16xf32>
    %3 = tpu.matmul %2, %1, %cst {dimension_numbers = #tpu.dot_dimension_numbers<[1], [0], [0], [1], [0, 0, 1, 1], [], []>} : vector<4x16xf32>, vector<16x16xf32>, vector<4x16xf32> -> vector<4x16xf32>
    %c0_4 = arith.constant 0 : index
    %c0_5 = arith.constant 0 : index
    %4 = vector.load %arg3[%c0_4, %c0_5] : memref<4x1xf32, #tpu.memory_space<vmem>>, vector<4x1xf32>
    %5 = vector.broadcast %4 : vector<4x1xf32> to vector<4x16xf32>
    %6 = arith.addf %3, %5 : vector<4x16xf32>
    %cst_6 = arith.constant 0.000000e+00 : f32
    %7 = vector.broadcast %cst_6 : f32 to vector<4x16xf32>
    %8 = arith.maximumf %6, %7 : vector<4x16xf32>
    %cst_7 = arith.constant 0.000000e+00 : f32
    %9 = vector.broadcast %cst_7 : f32 to vector<4x1xf32>
    %c0_8 = arith.constant 0 : index
    %c0_9 = arith.constant 0 : index
    %10 = vector.load %arg9[%c0_8, %c0_9] : memref<4x128xf32, #tpu.memory_space<vmem>>, vector<4x1xf32>
    tpu.vector_store %arg9[%c0_8, %c0_9], %9 {strides = array<i32>} : memref<4x128xf32, #tpu.memory_space<vmem>>, vector<4x1xf32>,
    %cst_10 = arith.constant 0.000000e+00 : f32
    %11 = vector.broadcast %cst_10 : f32 to vector<4x111xf32>
    %c0_11 = arith.constant 0 : index
    %c17 = arith.constant 17 : index
    %12 = vector.load %arg9[%c0_11, %c17] : memref<4x128xf32, #tpu.memory_space<vmem>>, vector<4x111xf32>
    tpu.vector_store %arg9[%c0_11, %c17], %11 {strides = array<i32>} : memref<4x128xf32, #tpu.memory_space<vmem>>, vector<4x111xf32>,
    %c0_12 = arith.constant 0 : index
    %c1 = arith.constant 1 : index
    %13 = vector.load %arg9[%c0_12, %c1] : memref<4x128xf32, #tpu.memory_space<vmem>>, vector<4x16xf32>
    tpu.vector_store %arg9[%c0_12, %c1], %8 {strides = array<i32>} : memref<4x128xf32, #tpu.memory_space<vmem>>, vector<4x16xf32>,
    %c0_13 = arith.constant 0 : index
    %c0_14 = arith.constant 0 : index
    %14 = vector.load %arg9[%c0_13, %c0_14] : memref<4x128xf32, #tpu.memory_space<vmem>>, vector<4x128xf32>
    %c0_15 = arith.constant 0 : index
    %c0_16 = arith.constant 0 : index
    %c0_17 = arith.constant 0 : index
    %15 = vector.load %arg4[%c0_15, %c0_16, %c0_17] : memref<3x4x4xf32, #tpu.memory_space<vmem>>, vector<1x4x4xf32>
    %16 = vector.shape_cast %15 : vector<1x4x4xf32> to vector<4x4xf32>
    %17 = vector.extract_strided_slice %14 {offsets = [0, 0], sizes = [4, 16], strides = [1, 1]} : vector<4x128xf32> to vector<4x16xf32>
    %cst_18 = arith.constant dense<0.000000e+00> : vector<4x16xf32>
    %18 = tpu.matmul %16, %17, %cst_18 {dimension_numbers = #tpu.dot_dimension_numbers<[1], [0], [0], [1], [0, 0, 1, 1], [], []>} : vector<4x4xf32>, vector<4x16xf32>, vector<4x16xf32> -> vector<4x16xf32>
    %c1_19 = arith.constant 1 : index
    %c0_20 = arith.constant 0 : index
    %c0_21 = arith.constant 0 : index
    %19 = vector.load %arg4[%c1_19, %c0_20, %c0_21] : memref<3x4x4xf32, #tpu.memory_space<vmem>>, vector<1x4x4xf32>
    %20 = vector.shape_cast %19 : vector<1x4x4xf32> to vector<4x4xf32>
    %21 = vector.extract_strided_slice %14 {offsets = [0, 1], sizes = [4, 16], strides = [1, 1]} : vector<4x128xf32> to vector<4x16xf32>
    %cst_22 = arith.constant dense<0.000000e+00> : vector<4x16xf32>
    %22 = tpu.matmul %20, %21, %cst_22 {dimension_numbers = #tpu.dot_dimension_numbers<[1], [0], [0], [1], [0, 0, 1, 1], [], []>} : vector<4x4xf32>, vector<4x16xf32>, vector<4x16xf32> -> vector<4x16xf32>
    %23 = arith.addf %18, %22 : vector<4x16xf32>
    %c2 = arith.constant 2 : index
    %c0_23 = arith.constant 0 : index
    %c0_24 = arith.constant 0 : index
    %24 = vector.load %arg4[%c2, %c0_23, %c0_24] : memref<3x4x4xf32, #tpu.memory_space<vmem>>, vector<1x4x4xf32>
    %25 = vector.shape_cast %24 : vector<1x4x4xf32> to vector<4x4xf32>
    %26 = vector.extract_strided_slice %14 {offsets = [0, 2], sizes = [4, 16], strides = [1, 1]} : vector<4x128xf32> to vector<4x16xf32>
    %cst_25 = arith.constant dense<0.000000e+00> : vector<4x16xf32>
    %27 = tpu.matmul %25, %26, %cst_25 {dimension_numbers = #tpu.dot_dimension_numbers<[1], [0], [0], [1], [0, 0, 1, 1], [], []>} : vector<4x4xf32>, vector<4x16xf32>, vector<4x16xf32> -> vector<4x16xf32>
    %28 = arith.addf %23, %27 : vector<4x16xf32>
    %c0_26 = arith.constant 0 : index
    %c0_27 = arith.constant 0 : index
    %29 = vector.load %arg5[%c0_26, %c0_27] : memref<4x1xf32, #tpu.memory_space<vmem>>, vector<4x1xf32>
    %30 = vector.broadcast %29 : vector<4x1xf32> to vector<4x16xf32>
    %31 = arith.addf %28, %30 : vector<4x16xf32>
    %cst_28 = arith.constant 0.000000e+00 : f32
    %32 = vector.broadcast %cst_28 : f32 to vector<4x16xf32>
    %33 = arith.maximumf %31, %32 : vector<4x16xf32>
    %c0_29 = arith.constant 0 : index
    %c0_30 = arith.constant 0 : index
    %34 = vector.load %arg6[%c0_29, %c0_30] : memref<16x4xf32, #tpu.memory_space<vmem>>, vector<16x4xf32>
    %cst_31 = arith.constant dense<0.000000e+00> : vector<16x16xf32>
    %35 = tpu.matmul %34, %33, %cst_31 {dimension_numbers = #tpu.dot_dimension_numbers<[1], [0], [0], [1], [0, 0, 1, 1], [], []>} : vector<16x4xf32>, vector<4x16xf32>, vector<16x16xf32> -> vector<16x16xf32>
    %c0_32 = arith.constant 0 : index
    %c0_33 = arith.constant 0 : index
    %36 = vector.load %arg7[%c0_32, %c0_33] : memref<16x1xf32, #tpu.memory_space<vmem>>, vector<16x1xf32>
    %37 = vector.broadcast %36 : vector<16x1xf32> to vector<16x16xf32>
    %38 = arith.addf %35, %37 : vector<16x16xf32>
    %39 = arith.addf %38, %1 : vector<16x16xf32>
    %cst_34 = arith.constant 0.000000e+00 : f32
    %40 = vector.broadcast %cst_34 : f32 to vector<16x16xf32>
    %41 = arith.maximumf %39, %40 : vector<16x16xf32>
    %c0_35 = arith.constant 0 : index
    %c0_36 = arith.constant 0 : index
    %c0_37 = arith.constant 0 : index
    %42 = vector.load %arg8[%c0_35, %c0_36, %c0_37] : memref<1x16x16xf32, #tpu.memory_space<vmem>>, vector<1x16x16xf32>
    %43 = vector.shape_cast %42 : vector<1x16x16xf32> to vector<16x16xf32>
    %44 = vector.shape_cast %41 : vector<16x16xf32> to vector<1x16x16xf32>
    tpu.vector_store %arg8[%c0_35, %c0_36, %c0_37], %44 {strides = array<i32>} : memref<1x16x16xf32, #tpu.memory_space<vmem>>, vector<1x16x16xf32>,
    return
  }
  func.func @transform_0(%arg0: i32) -> (i32, i32, i32) {
    %c0_i32 = arith.constant 0 : i32
    %c0_i32_0 = arith.constant 0 : i32
    %c0_i32_1 = arith.constant 0 : i32
    return %arg0, %c0_i32, %c0_i32_0 : i32, i32, i32
  }
  func.func @transform_1(%arg0: i32) -> (i32, i32) {
    %c0_i32 = arith.constant 0 : i32
    %c0_i32_0 = arith.constant 0 : i32
    %c0_i32_1 = arith.constant 0 : i32
    return %c0_i32, %c0_i32_0 : i32, i32
  }
  func.func @transform_2(%arg0: i32) -> (i32, i32) {
    %c0_i32 = arith.constant 0 : i32
    %c0_i32_0 = arith.constant 0 : i32
    %c0_i32_1 = arith.constant 0 : i32
    return %c0_i32, %c0_i32_0 : i32, i32
  }
  func.func @transform_3(%arg0: i32) -> (i32, i32, i32) {
    %c0_i32 = arith.constant 0 : i32
    %c0_i32_0 = arith.constant 0 : i32
    %c0_i32_1 = arith.constant 0 : i32
    %c0_i32_2 = arith.constant 0 : i32
    return %c0_i32, %c0_i32_0, %c0_i32_1 : i32, i32, i32
  }
  func.func @transform_4(%arg0: i32) -> (i32, i32) {
    %c0_i32 = arith.constant 0 : i32
    %c0_i32_0 = arith.constant 0 : i32
    %c0_i32_1 = arith.constant 0 : i32
    return %c0_i32, %c0_i32_0 : i32, i32
  }
  func.func @transform_5(%arg0: i32) -> (i32, i32) {
    %c0_i32 = arith.constant 0 : i32
    %c0_i32_0 = arith.constant 0 : i32
    %c0_i32_1 = arith.constant 0 : i32
    return %c0_i32, %c0_i32_0 : i32, i32
  }
  func.func @transform_6(%arg0: i32) -> (i32, i32) {
    %c0_i32 = arith.constant 0 : i32
    %c0_i32_0 = arith.constant 0 : i32
    %c0_i32_1 = arith.constant 0 : i32
    return %c0_i32, %c0_i32_0 : i32, i32
  }
  func.func @transform_7(%arg0: i32) -> (i32, i32, i32) {
    %c0_i32 = arith.constant 0 : i32
    %c0_i32_0 = arith.constant 0 : i32
    %c0_i32_1 = arith.constant 0 : i32
    return %arg0, %c0_i32, %c0_i32_0 : i32, i32, i32
  }
}

</mosaic_0001>

<bundles_post_ra>
// kernel: _lambda_.1
= control target key start
LH: loop header
LB: loop body
LE: loop exit
PB: predicated region body
PF: predicated region fallthrough
CT: control target
= control target key end

     0   :  { %12 = vsyncpa [#allocation4], 0  ;;  %s1188_s0 = inlined_call_operand.vmem [shape: f32[2,16,16], index: 0, kind: input, shape index: {}]   ;;  %s1189_s1 = inlined_call_operand.vmem [shape: f32[4,16], index: 1, kind: input, shape index: {}]   ;;  %s1190_s2 = inlined_call_operand.vmem [shape: f32[4,1], index: 2, kind: input, shape index: {}]   ;;  %s1191_s3 = inlined_call_operand.vmem [shape: f32[3,4,4], index: 3, kind: input, shape index: {}]   ;;  %s1192_s4 = inlined_call_operand.vmem [shape: f32[4,1], index: 4, kind: input, shape index: {}]   ;;  %s1193_s5 = inlined_call_operand.vmem [shape: f32[16,4], index: 5, kind: input, shape index: {}]   ;;  %s1194_s6 = inlined_call_operand.vmem [shape: f32[16,1], index: 6, kind: input, shape index: {}]   ;;  %s1195_s7 = inlined_call_operand.hbm [shape: f32[2,16,16], index: 7, kind: output, shape index: {}]  }
   0x1   :  { %14 = vsyncpa [#allocation4 + $0x1], 0  ;;  %s1030_s24 = smov 0   ;;  %s1032_s25 = smov 0  }
   0x2   :  { %s1034_s26 = smov 0   ;;  %s1036_s27 = smov 0  }
   0x3 LB: > { %s1051_s28 = sadd.s32 4294967295, %s978_s27   ;;  %s798_s29 = sadd.s32 4294967294, %s978_s27   ;;  %s978_s27 = sphi %s1036_s27, %s1201_s27   ;;  %s974_s26 = sphi %s1034_s26, %s1200_s26   ;;  %s970_s25 = sphi %s1032_s25, %s1199_s25   ;;  %s966_s24 = sphi %s1030_s24, %s1198_s24  }
   0x4   : > { %s1055_s30 = sadd.s32 1, %s978_s27   ;;  %s179_s8 = sadd.s32 1, %s974_s26 }
   0x5   : > { %s176_s9 = ssub.s32 %s978_s27, %s1055_s30  ;;  %p189_p0 = scmp.ne.s32.totalorder %s974_s26, %s970_s25 }
   0x6   : > { %p177_p1 = scmp.eq.s32.totalorder %s176_s9, 0  ;;  %p190_p2 = scmp.eq.s32.totalorder %s1051_s28, 1 }
   0x7   : > { %p195_p3 = scmp.ne.s32.totalorder %s970_s25, %s966_s24  ;;  %p196_p4 = scmp.eq.s32.totalorder %s798_s29, 1 }
   0x8   : > { %s1066_s10 = scalar_select %p177_p1, %s974_s26, %s179_s8  }
   0x9   : > { %p1068_p5 = por %p190_p2, %p189_p0  ;;  %p1072_p6 = por %p196_p4, %p195_p3 }
   0xa   : > { %p801_p7 = scmp.ge.s32.totalorder %s978_s27, 1  ;;  %p240_p8 = scmp.lt.s32.totalorder %s978_s27, 3 }
   0xc   : > { %p241_p9 = pnand %p801_p7, %p240_p8 }
   0xd   : > { %p272_p10 = scmp.lt.s32.totalorder (!%p241_p9), %s1051_s28, 1  ;;  %v980_v0 = vmov (!%p241_p9), 0.0|0.0   ;;  %vm981_vm0 = vmmov (!%p241_p9), 0   ;;  %v982_v1 = vmov (!%p241_p9), 0.0   ;;  %v280_v2 = vld [vmem:[%s1190_s2] sm:$0xf] (!%p241_p9) }
   0xe   : > { %244 = sbr.rel (%p241_p9) target bundleno = 946 (0x3b2), region = 48  ;;  %863 = vmatprep.subr.bf16.mxu0 (!%p241_p9), %v980_v0  ;;  %840 = vmatprep.mubr.msk.f32.mxu0 (!%p241_p9), %vm981_vm0, %v982_v1  ;;  %v983_v3 = vmov (!%p241_p9), 0   ;;  %v279_v7 = vld [vmem:[%s1189_s1] sm:$0xf] (!%p241_p9)  ;;  %vm286_vm1 = vcmask (!%p241_p9), 130048   ;;  %vm361_vm2 = vcmask (!%p241_p9), 3072  }
   0xf   : > { %914 = vset.pattern.permute.xlu0 (!%p241_p9), %v983_v3  ;;  %843 = vmatprep.subr.mxu1 (!%p241_p9), %v982_v1  ;;  %vm363_vm3 = vcmask (!%p241_p9), 1043592   ;;  %362 = vst.msk [vmem:[#allocation2] sm:$0xf] (!%p241_p9), %vm361_vm2, %v982_v1  ;;  %s984_s22 = smov (!%p241_p9), 1   ;;  %v610_v13 = vld [vmem:[%s1192_s4] sm:$0xf] (!%p241_p9) }
  0x10   : > { %283 = vperm.xlu0 (!%p241_p9), %914, %v280_v2   ;;  %845 = vmatprep.mubr.msk.f32.mxu1 (!%p241_p9), %vm981_vm0, %v982_v1  ;;  %364 = vst.msk [vmem:[#allocation2] sm:$0xf] (!%p241_p9), %vm363_vm3, %v982_v1  ;;  %v621_v14 = vld [vmem:[%s1194_s6 + $0x8] sm:$0xff] (!%p241_p9)  ;;  %vm369_vm4 = vcmask (!%p241_p9), 134152   ;;  %s985_s13 = smov (!%p241_p9), 127   ;;  %s986_s14 = smov (!%p241_p9), 126  }
  0x11   : > { %915 = vset.pattern.permute.xlu1 (!%p241_p9), %v983_v3  ;;  %vm382_vm5 = vcmask (!%p241_p9), 1043456   ;;  %v806_v17 = vld [vmem:[%s1191_s3 + $0x4] sm:$0xf] (!%p241_p9)  ;;  %vm378_vm6 = vcmask (!%p241_p9), 31744   ;;  %v372_v19 = vld [vmem:[%s1191_s3] sm:$0xf] (!%p241_p9) }
  0x12   : > { %v811_v20 = vld [vmem:[%s1191_s3 + $0x8] sm:$0xf] (!%p241_p9)  ;;  %v618_v22 = vld [vmem:[%s1193_s5] sm:$0xff] (!%p241_p9) }
  0x13   : > { %v620_v23 = vld [vmem:[%s1194_s6] sm:$0xff] (!%p241_p9)  ;;  %v619_v35 = vld [vmem:[%s1193_s5 + $0x8] sm:$0xff] (!%p241_p9) }
  0x15   : > { %s273_s15 = scalar_select %p272_p10, %s1051_s28, 1 }
  0x17   : > { %s822_s16 = sshll.u32 %s273_s15, 4  ;;  %s823_s15 = sshll.u32 %s1051_s28, 8 }
  0x18   : > { %s276_s19 = scalar_lea.vmem %s1188_s0, %s822_s16  ;;  %s1141_s20 = scalar_lea.hbm %s1195_s7, %s823_s15 }
  0x19   : > { %v1088_v4 = vld [vmem:[%s276_s19] sm:$0xff]  ;;  %v1090_v5 = vld [vmem:[%s276_s19 + $0x8] sm:$0xff] }
  0x1a   : > { %v864_v6 = vpack.c.bf16 %v1090_v5, %v1088_v4 }
  0x1c   : > { %865 = vmatpush3.bf16.msra.mxu0 %v864_v6 }
  0x1d   : > { %853 = vmatprep.subr.mxu0 %v982_v1 }
  0x1f   : > { %841 = vmatmul.mubr.msk.f32.vlgmr.msra.gmra.mrb[0].mxu0 %vm286_vm1, %v279_v7 }
  0x20   : > { %855 = vmatprep.mubr.msk.f32.mxu0 %vm981_vm0, %v982_v1 }
  0x8f   : > { %v284_v8 = vpop.permute.xlu0 %283 }
  0xf2   : > { %v356_v9 = vpop.f32.mrb[0].mxu0 }
  0xf3   : > { %v357_v10 = vadd.f32 %v356_v9, %v284_v8  ;;  %v842_v11 = vpop.f32.mrb[1].mxu0 }
  0xf5   : > { %v360_v12 = vmax.f32 %v357_v10, 0.0 }
  0xf7   : > { %366 = vrot.lane.b32.xlu0 %v360_v12, %s984_s22  ;;  %s987_s22 = smov [#allocation3]  }
  0xf8   : > { %s920_s23 = sshll.u32 %s987_s22, 4  ;;  %s921_s23 = int_to_ptr.vmem [resolvable:$false] %s920_s23 }
  0xf9   : > { %s922_s29 = scalar_lea.vmem %s921_s23, 512 }
  0xfb   : > { %613 = vperm.xlu0 %914, %v610_v13  }
  0xff   : > { %629 = vperm.xlu0 %914, %v621_v14  }
 0x169   : > { %v367_v15 = vpop.permute.xlu0 %366 }
 0x16a   : > { %370 = vst.msk [vmem:[#allocation2] sm:$0xf] %vm369_vm4, %v367_v15 }
 0x171   : > { %v371_v16 = vld [vmem:[#allocation2] sm:$0xf] }
 0x172   : > { %376 = vrot.lane.b32.xlu1 %v371_v16, %s985_s13  ;;  %s269_s13 = sand.u32 1, %s970_s25  }
 0x173   : > { %s1147_s28 = scalar_lea.sflag [#allocation4], %s269_s13 }
 0x176   : > { %532 = vrot.lane.b32.xlu1 %v371_v16, %s986_s14  ;;  %s802_s14 = sshll.u32 %s269_s13, 4 }
 0x177   : > { %s271_s16 = scalar_lea.vmem [#allocation3], %s802_s14 }
 0x178   : > { %s736_s17 = sshll.u32 %s271_s16, 4  ;;  %s1143_s17 = int_to_ptr.vmem [resolvable:$true] %s736_s17 }
 0x179   : > { %s916_s21 = scalar_lea.vmem %s1143_s17, 256  ;;  %p923_p0 = scmp.lt.s32.totalorder %s1143_s17, %s921_s23 }
 0x17a   : > { %624 = vperm.xlu1 %915, %v620_v23   ;;  %v614_v32 = vpop.permute.xlu0 %613  ;;  %p917_p11 = scmp.ne.s32.totalorder %s1143_s17, %s916_s21  ;;  %p924_p1 = scmp.lt.s32.totalorder %s922_s29, %s916_s21 }
 0x17c   : > { %p918_p12 = pnand %p917_p11, %p1068_p5  ;;  %p925_p2 = por %p924_p1, %p923_p0 }
 0x17e   : > { %v630_v37 = vpop.permute.xlu0 %629  ;;  %p919_p13 = pneg %p918_p12 }
 0x180   : > { %p926_p3 = pnand %p925_p2, %p919_p13 }
 0x1e4   : > { %v377_v18 = vpop.permute.xlu1 %376 }
 0x1e5   : > { %844 = vmatpush3.msk.msra.mxu1 %vm382_vm5, %v377_v18 }
 0x1e6   : > { %846 = vmatmul.mubr.msk.f32.vlgmr.msra.gmra.mrb[0].mxu1 %vm378_vm6, %v806_v17  ;;  %848 = vmatprep.subr.mxu1 %v982_v1 }
 0x1e7   : > { %849 = vmatpush3.msk.msra.mxu1 %vm382_vm5, %v371_v16  ;;  %850 = vmatprep.mubr.msk.f32.mxu1 %vm981_vm0, %v982_v1 }
 0x1e8   : > { %v533_v21 = vpop.permute.xlu1 %532 }
 0x1e9   : > { %854 = vmatpush3.msk.msra.mxu0 %vm382_vm5, %v533_v21 }
 0x1ea   : > { %851 = vmatmul.mubr.msk.f32.vlgmr.msra.gmra.mrb[2].mxu1 %vm378_vm6, %v372_v19  ;;  %856 = vmatmul.mubr.msk.f32.vlgmr.msra.gmra.mrb[2].mxu0 %vm378_vm6, %v811_v20 }
 0x1eb   : > { %860 = vmatprep.mubr.msk.f32.mxu1 %vm378_vm6, %v618_v22 }
 0x1f9   : > { %v625_v36 = vpop.permute.xlu1 %624 }
 0x2b9   : > { %v451_v24 = vpop.f32.mrb[0].mxu1 }
 0x2ba   : > { %v847_v25 = vpop.f32.mrb[1].mxu1 }
 0x2bd   : > { %v526_v26 = vpop.f32.mrb[2].mxu1  ;;  %v605_v27 = vpop.f32.mrb[2].mxu0 }
 0x2be   : > { %v527_v28 = vadd.f32 %v526_v26, %v451_v24  ;;  %v852_v29 = vpop.f32.mrb[3].mxu1  ;;  %v857_v30 = vpop.f32.mrb[3].mxu0 }
 0x2c0   : > { %v609_v31 = vadd.f32 %v605_v27, %v527_v28 }
 0x2c2   : > { %v616_v33 = vadd.f32 %v614_v32, %v609_v31 }
 0x2c4   : > { %v617_v34 = vmax.f32 %v616_v33, 0.0 }
 0x2c6   : > { %858 = vmatprep.subr.msk.mxu1 %vm382_vm5, %v617_v34 }
 0x2c7   : > { %859 = vmatpush3.msk.msra.mxu1 %vm382_vm5, %v617_v34 }
 0x2c8   : > { %861 = vmatmul.mubr.msk.f32.vlgmr.msra.gmra.mrb[4].mxu1 %vm378_vm6, %v619_v35 }
 0x39b   : > { %v862_v38 = vpop.f32.mrb[4].mxu1 }
 0x39c   : > { %v713_v39 = vadd.f32 %v862_v38, %v630_v37  ;;  %v707_v40 = vpop.f32.mrb[5].mxu1 }
 0x39d   : > { %v708_v41 = vadd.f32 %v707_v40, %v625_v36 }
 0x39e   : > { %v717_v42 = vadd.f32 %v713_v39, %v1090_v5 }
 0x39f   : > { %v716_v43 = vadd.f32 %v708_v41, %v1088_v4 }
 0x3a0   : > { %v719_v44 = vmax.f32 %v717_v42, 0.0 }
 0x3a1   : > { %v718_v45 = vmax.f32 %v716_v43, 0.0 }
 0x3a2   : > { %721 = vst.msk [vmem:[%s271_s16 + $0x8] sm:$0xff] %vm286_vm1, %v719_v44 }
 0x3a3   : > { %720 = vst.msk [vmem:[%s271_s16] sm:$0xff] %vm286_vm1, %v718_v45 }
 0x3a4   : > { %929 = shalt.err (!%p926_p3)
}
 0x3a5   : > { %s930_s8 = scalar_lea.hbm %s1141_s20, 256  ;;  %s934_s14 = scalar_lea.hbm %s1195_s7, 512 }
 0x3a6   : > { %p931_p4 = scmp.ne.s32.totalorder %s1141_s20, %s930_s8  ;;  %p935_p9 = scmp.lt.u32.totalorder %s1141_s20, %s1195_s7 }
 0x3a7   : > { %p936_p10 = scmp.lt.u32.totalorder %s934_s14, %s930_s8  ;;  %p938_p12 = scmp.lt.u32.totalorder %s930_s8, %s1141_s20 }
 0x3a8   : > { %p932_p7 = pnand %p931_p4, %p1068_p5 }
 0x3a9   : > { %p937_p11 = por %p936_p10, %p935_p9 }
 0x3aa   : > { %p933_p8 = pneg %p932_p7 }
 0x3ab   : > { %p939_p13 = por %p938_p12, %p937_p11 }
 0x3ad   : > { %p940_p0 = pnand %p939_p13, %p933_p8 }
 0x3af   : > { %943 = shalt.err (!%p940_p0)
}
 0x3b0   : > { %s988_s18 = smov 128   ;;  %s989_s19 = smov 8  }
 0x3b1   : > { %866 = dma.vmem_to_hbm [thread:$0]  (%p1068_p5), %s1143_s17, 256, %s1141_s20, %s1147_s28, %s988_s18, %s988_s18, %s989_s19  }
 0x3b2 PF: > { %p872_p1 = scmp.ge.s32.totalorder %s978_s27, 2  ;;  %s751_s21 = sand.u32 1, %s966_s24  }
 0x3b3   : > { %s752_s22 = scalar_lea.sflag [#allocation4], %s751_s21 }
 0x3b4   : > { %p869_p2 = pnand %p872_p1, %p1072_p6 }
 0x3b6   : > { %961 = dma.done.wait (!%p869_p2), %s752_s22, 256  }
 0x3b7   : > { %963 = vsyncadd (!%p869_p2), %s752_s22, 4294967040  ;;  %p17_p3 = scmp.ge.s32.totalorder %s1055_s30, 4   ;;  %s1198_s24 = smov %s970_s25 }
 0x3b8   : > { %s1199_s25 = smov %s974_s26  ;;  %s1200_s26 = smov %s1066_s10 }
 0x3b9   : > { %s1201_s27 = smov %s1055_s30  ;;  %19 = sbr.rel (!%p17_p3) target bundleno = 3 (0x3), region = 85 }
 0x3c0   :  { %757 = vsyncpa [#allocation4], 1 }
 0x3c1   :  { %759 = vsyncpa [#allocation4 + $0x1], 1 }

</bundles_post_ra>
